<compile_context>
chip_gen: v7x
topology: tpu7x:2x2x1
jax: 0.10.0
libtpu: 0.0.40
codegen_flags: <defaults>
</compile_context>

<pallas_src>
import functools

import jax
import jax.numpy as jnp
from jax.experimental import pallas as pl
from jax.experimental.pallas import tpu as pltpu


def _round_up(x, m):
    return ((x + m - 1) // m) * m


def _ce_kernel(x_ref, t_ref, loss_ref, *, num_classes, label_smoothing):
    """Per-row cross entropy for one (block_rows, C) tile of logits."""
    x = x_ref[...].astype(jnp.float32)                       # (BR, C)
    t = t_ref[...]                                           # (BR, 1) int32

    # Numerically stable log-sum-exp per row (EUP exp/log, XLU row reduce).
    m = jnp.max(x, axis=-1, keepdims=True)                   # (BR, 1)
    e = jnp.exp(x - m)
    lse = jnp.log(jnp.sum(e, axis=-1, keepdims=True)) + m    # (BR, 1)

    # Gather the target logit with a one-hot mask (no dynamic gather on TPU).
    col = jax.lax.broadcasted_iota(jnp.int32, x.shape, 1)    # (BR, C)
    onehot = (col == t).astype(jnp.float32)
    tgt_logit = jnp.sum(x * onehot, axis=-1, keepdims=True)  # (BR, 1)

    nll = lse - tgt_logit                                    # -log p[target]
    if label_smoothing != 0.0:
        mean_logit = jnp.sum(x, axis=-1, keepdims=True) * (1.0 / num_classes)
        smooth = lse - mean_logit                            # mean_c(-log p_c)
        loss = (1.0 - label_smoothing) * nll + label_smoothing * smooth
    else:
        loss = nll

    loss_ref[...] = loss


def ce_scaled(preds, target, label_smoothing=0.0, block_rows=None):
    """F.cross_entropy(preds, target, label_smoothing=...) with mean reduction.

    preds:  (N, C) or (N, C, d1, ..., dk) logits.
    target: (N,)   or (N, d1, ..., dk)    integer class indices.
    """
    # Canonicalize to (rows, C) logits + (rows,) int32 class indices.
    if preds.ndim == 2:
        preds2d = preds
        tgt = target.reshape(-1)
    else:
        c_dim = preds.shape[1]
        perm = (0,) + tuple(range(2, preds.ndim)) + (1,)     # N,d1..dk,C
        preds2d = jnp.transpose(preds, perm).reshape(-1, c_dim)
        tgt = target.reshape(-1)

    B, C = preds2d.shape
    tgt = tgt.astype(jnp.int32)

    # Row-block size: ~512 KiB of logits per tile, multiple of 8, capped.
    if block_rows is None:
        itemsize = jnp.dtype(preds2d.dtype).itemsize
        budget_rows = max(8, (512 * 1024) // max(1, C * itemsize))
        block_rows = min(2048, budget_rows)
        block_rows = max(8, (block_rows // 8) * 8)
    block_rows = min(block_rows, _round_up(B, 8))

    B_pad = _round_up(B, block_rows)
    if B_pad != B:
        # Only the ragged tail (< block_rows rows) is padded; padded rows are
        # dropped before the mean, so their values don't matter.
        preds2d = jnp.pad(preds2d, ((0, B_pad - B), (0, 0)))
        tgt = jnp.pad(tgt, (0, B_pad - B))
    tgt2d = tgt.reshape(B_pad, 1)

    kernel = functools.partial(
        _ce_kernel, num_classes=C, label_smoothing=float(label_smoothing)
    )

    losses = pl.pallas_call(
        kernel,
        out_shape=jax.ShapeDtypeStruct((B_pad, 1), jnp.float32),
        grid=(B_pad // block_rows,),
        in_specs=[
            pl.BlockSpec((block_rows, C), lambda i: (i, 0)),
            pl.BlockSpec((block_rows, 1), lambda i: (i, 0)),
        ],
        out_specs=pl.BlockSpec((block_rows, 1), lambda i: (i, 0)),
        compiler_params=pltpu.CompilerParams(
            dimension_semantics=("parallel",)
        ),
    )(preds2d, tgt2d)

    return jnp.mean(losses[:B, 0])


def _reference(preds, target, label_smoothing=0.0):
    if preds.ndim > 2:
        c_dim = preds.shape[1]
        perm = (0,) + tuple(range(2, preds.ndim)) + (1,)
        p = jnp.transpose(preds, perm).reshape(-1, c_dim)
        t = target.reshape(-1)
    else:
        p, t = preds, target.reshape(-1)
    logp = jax.nn.log_softmax(p.astype(jnp.float32), axis=-1)
    nll = -jnp.take_along_axis(logp, t[:, None].astype(jnp.int32), axis=-1)[:, 0]
    smooth = -jnp.mean(logp, axis=-1)
    return jnp.mean((1.0 - label_smoothing) * nll + label_smoothing * smooth)


if __name__ == "__main__":
    key = jax.random.PRNGKey(0)
    k1, k2, k3, k4 = jax.random.split(key, 4)

    # Case 1: plain (batch, num_classes) logits + class-index targets,
    # default label_smoothing=0.0 (matches CE_scaled()).
    preds_a = jax.random.normal(k1, (64, 128), dtype=jnp.float32) * 3.0
    target_a = jax.random.randint(k2, (64,), 0, 128, dtype=jnp.int32)

    out_a = ce_scaled(preds_a, target_a, label_smoothing=0.0)
    jax.block_until_ready(out_a)
    ref_a = _reference(preds_a, target_a, 0.0)
    assert jnp.allclose(out_a, ref_a, rtol=1e-5, atol=1e-4), (out_a, ref_a)

    # Case 2: NCHW logits with per-pixel targets and label smoothing.
    preds_b = jax.random.normal(k3, (2, 4, 16, 16), dtype=jnp.float32)
    target_b = jax.random.randint(k4, (2, 16, 16), 0, 4, dtype=jnp.int32)

    out_b = ce_scaled(preds_b, target_b, label_smoothing=0.1)
    jax.block_until_ready(out_b)
    ref_b = _reference(preds_b, target_b, 0.1)
    assert jnp.allclose(out_b, ref_b, rtol=1e-5, atol=1e-4), (out_b, ref_b)

    print("KERNEL_OK")
</pallas_src>

<mosaic_0001>
module attributes {stable_mosaic.version = 11 : i64} {
  func.func @_ce_kernel(%arg0: i32, %arg1: memref<64x128xf32, #tpu.memory_space<vmem>>, %arg2: memref<64x1xi32, #tpu.memory_space<vmem>>, %arg3: memref<64x1xf32, #tpu.memory_space<vmem>>) attributes {dimension_semantics = [#tpu.dimension_semantics<parallel>], iteration_bounds = array<i64: 1>, scalar_prefetch = 0 : i64, scratch_operands = 0 : i64, tpu.core_type = #tpu.core_type<tc>, window_params = [{transform_indices = @transform_0, window_bounds = array<i64: 64, 128>}, {transform_indices = @transform_1, window_bounds = array<i64: 64, 1>}, {transform_indices = @transform_2, window_bounds = array<i64: 64, 1>}]} {
    %c0 = arith.constant 0 : index
    %c0_0 = arith.constant 0 : index
    %0 = vector.load %arg1[%c0, %c0_0] : memref<64x128xf32, #tpu.memory_space<vmem>>, vector<64x128xf32>
    %c0_1 = arith.constant 0 : index
    %c0_2 = arith.constant 0 : index
    %1 = vector.load %arg2[%c0_1, %c0_2] : memref<64x1xi32, #tpu.memory_space<vmem>>, vector<64x1xi32>
    %cst = arith.constant dense<0xFF800000> : vector<64xf32>
    %2 = vector.multi_reduction <maximumf>, %0, %cst [1] : vector<64x128xf32> to vector<64xf32>
    %3 = vector.shape_cast %2 : vector<64xf32> to vector<64x1xf32>
    %4 = vector.broadcast %3 : vector<64x1xf32> to vector<64x128xf32>
    %5 = arith.subf %0, %4 : vector<64x128xf32>
    %6 = math.exp %5 : vector<64x128xf32>
    %cst_3 = arith.constant dense<0.000000e+00> : vector<64xf32>
    %7 = vector.multi_reduction <add>, %6, %cst_3 [1] : vector<64x128xf32> to vector<64xf32>
    %8 = vector.shape_cast %7 : vector<64xf32> to vector<64x1xf32>
    %9 = math.log %8 : vector<64x1xf32>
    %10 = arith.addf %9, %3 : vector<64x1xf32>
    %11 = tpu.iota {dimensions = array<i32: 1>} : vector<64x128xi32>
    %12 = vector.broadcast %1 : vector<64x1xi32> to vector<64x128xi32>
    %13 = arith.cmpi eq, %11, %12 : vector<64x128xi32>
    %14 = arith.extui %13 : vector<64x128xi1> to vector<64x128xi32>
    %15 = arith.sitofp %14 : vector<64x128xi32> to vector<64x128xf32>
    %16 = arith.mulf %0, %15 : vector<64x128xf32>
    %cst_4 = arith.constant dense<0.000000e+00> : vector<64xf32>
    %17 = vector.multi_reduction <add>, %16, %cst_4 [1] : vector<64x128xf32> to vector<64xf32>
    %18 = vector.shape_cast %17 : vector<64xf32> to vector<64x1xf32>
    %19 = arith.subf %10, %18 : vector<64x1xf32>
    %c0_5 = arith.constant 0 : index
    %c0_6 = arith.constant 0 : index
    %20 = vector.load %arg3[%c0_5, %c0_6] : memref<64x1xf32, #tpu.memory_space<vmem>>, vector<64x1xf32>
    tpu.vector_store %arg3[%c0_5, %c0_6], %19 {strides = array<i32>} : memref<64x1xf32, #tpu.memory_space<vmem>>, vector<64x1xf32>,
    return
  }
  func.func @transform_0(%arg0: i32) -> (i32, i32) {
    %c0_i32 = arith.constant 0 : i32
    %c0_i32_0 = arith.constant 0 : i32
    return %arg0, %c0_i32 : i32, i32
  }
  func.func @transform_1(%arg0: i32) -> (i32, i32) {
    %c0_i32 = arith.constant 0 : i32
    %c0_i32_0 = arith.constant 0 : i32
    return %arg0, %c0_i32 : i32, i32
  }
  func.func @transform_2(%arg0: i32) -> (i32, i32) {
    %c0_i32 = arith.constant 0 : i32
    %c0_i32_0 = arith.constant 0 : i32
    return %arg0, %c0_i32 : i32, i32
  }
}

</mosaic_0001>

<bundles_post_ra>
// kernel: tpu_custom_call.1
= control target key start
LH: loop header
LB: loop body
LE: loop exit
PB: predicated region body
PF: predicated region fallthrough
CT: control target
= control target key end

     0   :  { %v246_v2 = vmov 0   ;;  %v107_v43 = vlaneseq  ;;  %v247_v54 = vmov 0.0   ;;  %vm189_vm8 = vcmask 7168   ;;  %s415_s0 = inlined_call_operand.vmem [shape: f32[64,128], index: 0, kind: input, shape index: {}]   ;;  %s416_s1 = inlined_call_operand.vmem [shape: s32[64,1], index: 1, kind: input, shape index: {}]   ;;  %s417_s2 = inlined_call_operand.vmem [shape: f32[64,1], index: 2, kind: output, shape index: {}]  }
   0x1   :  { %v266_v0 = vld [vmem:[%s415_s0 + $0x10] sm:$0xff]  ;;  %v271_v1 = vld [vmem:[%s415_s0] sm:$0xff]  ;;  %213 = vset.pattern.permute.xlu1 %v246_v2  ;;  %212 = vset.pattern.permute.xlu0 %v246_v2  ;;  %v278_v3 = vld [vmem:[%s415_s0 + $0x18] sm:$0xff] }
   0x2   :  { %31 = vmax.xlane.f32.xlu1 %v266_v0  ;;  %27 = vmax.xlane.f32.xlu0 %v271_v1  ;;  %v283_v4 = vld [vmem:[%s415_s0 + $0x8] sm:$0xff]  ;;  %v295_v6 = vld [vmem:[%s415_s0 + $0x20] sm:$0xff]  ;;  %v302_v7 = vld [vmem:[%s415_s0 + $0x38] sm:$0xff]  ;;  %v108_v47 = vand.u32 127, %v107_v43 }
   0x3   :  { %v290_v5 = vld [vmem:[%s415_s0 + $0x28] sm:$0xff]  ;;  %v307_v8 = vld [vmem:[%s415_s0 + $0x30] sm:$0xff]  ;;  %v19_v11 = vld [vmem:[%s416_s1] sm:$0xff] }
   0x4   :  { %v20_v9 = vld [vmem:[%s416_s1 + $0x8] sm:$0xff]  ;;  %v21_v10 = vld [vmem:[%s416_s1 + $0x10] sm:$0xff]  ;;  %v22_v12 = vld [vmem:[%s416_s1 + $0x18] sm:$0xff] }
   0x5   :  { %v23_v13 = vld [vmem:[%s416_s1 + $0x20] sm:$0xff]  ;;  %v24_v14 = vld [vmem:[%s416_s1 + $0x28] sm:$0xff]  ;;  %v25_v15 = vld [vmem:[%s416_s1 + $0x30] sm:$0xff] }
   0x6   :  { %33 = vmax.xlane.f32.xlu1 %v278_v3  ;;  %29 = vmax.xlane.f32.xlu0 %v283_v4  ;;  %v26_v16 = vld [vmem:[%s416_s1 + $0x38] sm:$0xff] }
   0xa   :  { %37 = vmax.xlane.f32.xlu1 %v290_v5  ;;  %35 = vmax.xlane.f32.xlu0 %v295_v6 }
   0xe   :  { %41 = vmax.xlane.f32.xlu1 %v302_v7  ;;  %39 = vmax.xlane.f32.xlu0 %v307_v8 }
  0x1f   :  { %113 = vperm.xlu1 %213, %v20_v9  }
  0x23   :  { %116 = vperm.xlu1 %213, %v21_v10  }
  0x24   :  { %110 = vperm.xlu0 %212, %v19_v11  }
  0x27   :  { %119 = vperm.xlu1 %213, %v22_v12  }
  0x2b   :  { %122 = vperm.xlu1 %213, %v23_v13  }
  0x2f   :  { %125 = vperm.xlu1 %213, %v24_v14  }
  0x33   :  { %128 = vperm.xlu1 %213, %v25_v15  }
  0x37   :  { %131 = vperm.xlu1 %213, %v26_v16  }
  0x8f   :  { %v335_v17 = vpop.xlane.xlu1 %31  ;;  %v337_v18 = vpop.xlane.xlu0 %27 }
  0x90   :  { %v43_v19 = vsub.f32 %v271_v1, %v337_v18  ;;  %v45_v25 = vsub.f32 %v266_v0, %v335_v17 }
  0x92   :  { %v51_v20 = vmul.f32 1.442695, %v43_v19  ;;  %v55_v32 = vmul.f32 1.442695, %v45_v25 }
  0x93   :  { %v341_v21 = vpop.xlane.xlu1 %33  ;;  %v343_v22 = vpop.xlane.xlu0 %29 }
  0x94   :  { %v46_v23 = vsub.f32 %v278_v3, %v341_v21  ;;  %v44_v24 = vsub.f32 %v283_v4, %v343_v22  ;;  %214 = vpow2.f32 %v51_v20 }
  0x96   :  { %v57_v26 = vmul.f32 1.442695, %v46_v23  ;;  %v53_v27 = vmul.f32 1.442695, %v44_v24 }
  0x97   :  { %v351_v28 = vpop.xlane.xlu1 %37  ;;  %v353_v29 = vpop.xlane.xlu0 %35 }
  0x98   :  { %216 = vpow2.f32 %v57_v26  ;;  %v48_v30 = vsub.f32 %v290_v5, %v351_v28  ;;  %v47_v31 = vsub.f32 %v295_v6, %v353_v29 }
  0x99   :  { %218 = vpow2.f32 %v53_v27 }
  0x9a   :  { %v61_v33 = vmul.f32 1.442695, %v48_v30  ;;  %v59_v35 = vmul.f32 1.442695, %v47_v31 }
  0x9b   :  { %v359_v34 = vpop.xlane.xlu1 %41  ;;  %v361_v36 = vpop.xlane.xlu0 %39 }
  0x9c   :  { %220 = vpow2.f32 %v61_v33  ;;  %v50_v37 = vsub.f32 %v302_v7, %v359_v34  ;;  %v49_v38 = vsub.f32 %v307_v8, %v361_v36 }
  0x9d   :  { %222 = vpow2.f32 %v55_v32 }
  0x9e   :  { %v65_v39 = vmul.f32 1.442695, %v50_v37  ;;  %v215_v40 = vpop.eup %214  ;;  %224 = vpow2.f32 %v59_v35  ;;  %v63_v42 = vmul.f32 1.442695, %v49_v38 }
  0x9f   :  { %v114_v41 = vpop.permute.xlu1 %113  ;;  %67 = vadd.xlane.f32.xlu1 %v215_v40 }
  0xa0   :  { %226 = vpow2.f32 %v65_v39  ;;  %vm134_vm0 = vcmp.eq.s32.totalorder %v108_v47, %v114_v41 }
  0xa1   :  { %228 = vpow2.f32 %v63_v42  ;;  %v203_v55 = vsel %vm134_vm0, 1.0, %v247_v54 }
  0xa2   :  { %v217_v44 = vpop.eup %216  ;;  %v158_v59 = vmul.f32 %v203_v55, %v283_v4 }
  0xa3   :  { %v219_v45 = vpop.eup %218  ;;  %v117_v46 = vpop.permute.xlu1 %116  ;;  %73 = vadd.xlane.f32.xlu1 %v217_v44 }
  0xa4   :  { %69 = vadd.xlane.f32.xlu0 %v219_v45  ;;  %v111_v51 = vpop.permute.xlu0 %110  ;;  %vm135_vm3 = vcmp.eq.s32.totalorder %v108_v47, %v117_v46 }
  0xa5   :  { %vm133_vm1 = vcmp.eq.s32.totalorder %v108_v47, %v111_v51  ;;  %v204_v2 = vsel %vm135_vm3, 1.0, %v247_v54 }
  0xa6   :  { %v221_v48 = vpop.eup %220  ;;  %v202_v58 = vsel %vm133_vm1, 1.0, %v247_v54  ;;  %v159_v4 = vmul.f32 %v204_v2, %v266_v0 }
  0xa7   :  { %v223_v49 = vpop.eup %222  ;;  %v120_v50 = vpop.permute.xlu1 %119  ;;  %77 = vadd.xlane.f32.xlu1 %v221_v48  ;;  %v157_v62 = vmul.f32 %v202_v58, %v271_v1 }
  0xa8   :  { %71 = vadd.xlane.f32.xlu0 %v223_v49  ;;  %v225_v52 = vpop.eup %224  ;;  %vm136_vm2 = vcmp.eq.s32.totalorder %v108_v47, %v120_v50 }
  0xa9   :  { %v205_v60 = vsel %vm136_vm2, 1.0, %v247_v54 }
  0xaa   :  { %v227_v53 = vpop.eup %226  ;;  %v160_v63 = vmul.f32 %v205_v60, %v278_v3 }
  0xab   :  { %v123_v56 = vpop.permute.xlu1 %122  ;;  %81 = vadd.xlane.f32.xlu1 %v227_v53  ;;  %v229_v57 = vpop.eup %228 }
  0xac   :  { %75 = vadd.xlane.f32.xlu0 %v225_v52  ;;  %vm137_vm5 = vcmp.eq.s32.totalorder %v108_v47, %v123_v56 }
  0xad   :  { %v206_v12 = vsel %vm137_vm5, 1.0, %v247_v54 }
  0xae   :  { %v161_v1 = vmul.f32 %v206_v12, %v295_v6 }
  0xaf   :  { %v126_v61 = vpop.permute.xlu1 %125  ;;  %167 = vadd.xlane.f32.xlu1 %v158_v59 }
  0xb0   :  { %vm138_vm4 = vcmp.eq.s32.totalorder %v108_v47, %v126_v61  ;;  %79 = vadd.xlane.f32.xlu0 %v229_v57 }
  0xb1   :  { %v207_v9 = vsel %vm138_vm4, 1.0, %v247_v54 }
  0xb2   :  { %v162_v11 = vmul.f32 %v207_v9, %v290_v5 }
  0xb3   :  { %v129_v10 = vpop.permute.xlu1 %128  ;;  %171 = vadd.xlane.f32.xlu1 %v160_v63 }
  0xb4   :  { %165 = vadd.xlane.f32.xlu0 %v157_v62  ;;  %vm139_vm6 = vcmp.eq.s32.totalorder %v108_v47, %v129_v10 }
  0xb5   :  { %v208_v15 = vsel %vm139_vm6, 1.0, %v247_v54 }
  0xb6   :  { %v163_v16 = vmul.f32 %v208_v15, %v307_v8 }
  0xb7   :  { %v132_v13 = vpop.permute.xlu1 %131  ;;  %175 = vadd.xlane.f32.xlu1 %v162_v11 }
  0xb8   :  { %vm140_vm7 = vcmp.eq.s32.totalorder %v108_v47, %v132_v13  ;;  %169 = vadd.xlane.f32.xlu0 %v159_v4 }
  0xb9   :  { %v209_v14 = vsel %vm140_vm7, 1.0, %v247_v54 }
  0xba   :  { %v164_v3 = vmul.f32 %v209_v14, %v302_v7 }
  0xbc   :  { %173 = vadd.xlane.f32.xlu0 %v161_v1  ;;  %179 = vadd.xlane.f32.xlu1 %v164_v3 }
  0xc0   :  { %177 = vadd.xlane.f32.xlu0 %v163_v16 }
 0x12c   :  { %v68_v5 = vpop.xlane.xlu1 %67 }
 0x12d   :  { %230 = vlog2.f32 %v68_v5 }
 0x130   :  { %v74_v0 = vpop.xlane.xlu1 %73 }
 0x131   :  { %v70_v19 = vpop.xlane.xlu0 %69  ;;  %232 = vlog2.f32 %v74_v0 }
 0x132   :  { %234 = vlog2.f32 %v70_v19 }
 0x134   :  { %v78_v20 = vpop.xlane.xlu1 %77 }
 0x135   :  { %v72_v23 = vpop.xlane.xlu0 %71  ;;  %236 = vlog2.f32 %v78_v20 }
 0x136   :  { %238 = vlog2.f32 %v72_v23 }
 0x137   :  { %v231_v24 = vpop.eup %230 }
 0x138   :  { %v82_v6 = vpop.xlane.xlu1 %81  ;;  %v84_v26 = vmul.f32 0.6931472, %v231_v24 }
 0x139   :  { %v76_v25 = vpop.xlane.xlu0 %75  ;;  %240 = vlog2.f32 %v82_v6 }
 0x13a   :  { %242 = vlog2.f32 %v76_v25  ;;  %v99_v38 = vadd.f32 %v84_v26, %v337_v18 }
 0x13b   :  { %v233_v7 = vpop.eup %232 }
 0x13c   :  { %v235_v27 = vpop.eup %234  ;;  %v90_v8 = vmul.f32 0.6931472, %v233_v7  ;;  %v168_v30 = vpop.xlane.xlu1 %167 }
 0x13d   :  { %v80_v31 = vpop.xlane.xlu0 %79  ;;  %v86_v32 = vmul.f32 0.6931472, %v235_v27 }
 0x13e   :  { %244 = vlog2.f32 %v80_v31  ;;  %v102_v33 = vadd.f32 %v90_v8, %v341_v21 }
 0x13f   :  { %v237_v35 = vpop.eup %236  ;;  %v100_v37 = vadd.f32 %v86_v32, %v343_v22 }
 0x140   :  { %v239_v39 = vpop.eup %238  ;;  %v94_v40 = vmul.f32 0.6931472, %v237_v35  ;;  %v172_v41 = vpop.xlane.xlu1 %171 }
 0x141   :  { %v166_v42 = vpop.xlane.xlu0 %165  ;;  %v88_v43 = vmul.f32 0.6931472, %v239_v39  ;;  %v182_v44 = vsub.f32 %v100_v37, %v168_v30  ;;  %v184_v45 = vsub.f32 %v102_v33, %v172_v41 }
 0x142   :  { %v181_v46 = vsub.f32 %v99_v38, %v166_v42  ;;  %v104_v47 = vadd.f32 %v94_v40, %v351_v28 }
 0x143   :  { %v241_v48 = vpop.eup %240  ;;  %191 = vst.msk [vmem:[%s417_s2 + $0x8] sm:$0xff] %vm189_vm8, %v182_v44  ;;  %193 = vst.msk [vmem:[%s417_s2 + $0x18] sm:$0xff] %vm189_vm8, %v184_v45  ;;  %v101_v18 = vadd.f32 %v88_v43, %v335_v17 }
 0x144   :  { %190 = vst.msk [vmem:[%s417_s2] sm:$0xff] %vm189_vm8, %v181_v46  ;;  %v243_v21 = vpop.eup %242  ;;  %v98_v22 = vmul.f32 0.6931472, %v241_v48  ;;  %v176_v28 = vpop.xlane.xlu1 %175 }
 0x145   :  { %v170_v49 = vpop.xlane.xlu0 %169  ;;  %v92_v50 = vmul.f32 0.6931472, %v243_v21  ;;  %v186_v51 = vsub.f32 %v104_v47, %v176_v28 }
 0x146   :  { %v183_v52 = vsub.f32 %v101_v18, %v170_v49  ;;  %v106_v54 = vadd.f32 %v98_v22, %v359_v34 }
 0x147   :  { %195 = vst.msk [vmem:[%s417_s2 + $0x28] sm:$0xff] %vm189_vm8, %v186_v51  ;;  %v103_v17 = vadd.f32 %v92_v50, %v353_v29 }
 0x148   :  { %v245_v53 = vpop.eup %244  ;;  %192 = vst.msk [vmem:[%s417_s2 + $0x10] sm:$0xff] %vm189_vm8, %v183_v52 }
 0x149   :  { %v96_v55 = vmul.f32 0.6931472, %v245_v53  ;;  %v174_v56 = vpop.xlane.xlu0 %173  ;;  %v180_v57 = vpop.xlane.xlu1 %179 }
 0x14a   :  { %v185_v58 = vsub.f32 %v103_v17, %v174_v56  ;;  %v188_v59 = vsub.f32 %v106_v54, %v180_v57 }
 0x14b   :  { %v105_v60 = vadd.f32 %v96_v55, %v361_v36 }
 0x14c   :  { %194 = vst.msk [vmem:[%s417_s2 + $0x20] sm:$0xff] %vm189_vm8, %v185_v58  ;;  %197 = vst.msk [vmem:[%s417_s2 + $0x38] sm:$0xff] %vm189_vm8, %v188_v59 }
 0x14d   :  { %v178_v29 = vpop.xlane.xlu0 %177 }
 0x14e   :  { %v187_v61 = vsub.f32 %v105_v60, %v178_v29 }
 0x150   :  { %196 = vst.msk [vmem:[%s417_s2 + $0x30] sm:$0xff] %vm189_vm8, %v187_v61 }

</bundles_post_ra>
